<compile_context>
chip_gen: v7x
topology: tpu7x:2x2x1
jax: 0.10.0
libtpu: 0.0.40
codegen_flags: <defaults>
</compile_context>

<pallas_src>
import jax
import jax.numpy as jnp
from jax.experimental import pallas as pl
from jax.experimental.pallas import tpu as pltpu

NUM_INPUTS = 2       # env.observation_space.shape[0]
HIDDEN = 128
NUM_ACTIONS = 15     # env.action_space.n == len(np.linspace(0, 5, 15))
PADDED_OUT = 128     # lane-dense output width (>= NUM_ACTIONS, multiple of 128)


# ---------------------------------------------------------------------------
# Kernel bodies
# ---------------------------------------------------------------------------

def _q_values(x_ref, w1_ref, b1_ref, w2_ref, b2_ref, w3p_ref, b3p_ref):
    """Compute the (tb, 128) f32 Q-value slab (lanes >= NUM_ACTIONS are zero)."""
    x = x_ref[...]                                            # (tb, 2) f32

    # Layer 1: Linear(2 -> 128) + ReLU on the VPU (K=2 would waste an MXU pass
    # and a 64x larger x DMA).
    h1 = (x[:, 0:1] * w1_ref[0:1, :]
          + x[:, 1:2] * w1_ref[1:2, :]
          + b1_ref[...])                                      # (tb, 128) f32
    h1 = jnp.maximum(h1, 0.0)

    # Layer 2: Linear(128 -> 128) + ReLU — bf16 MXU operands, f32 accumulation.
    h2 = jnp.dot(h1.astype(jnp.bfloat16), w2_ref[...],
                 preferred_element_type=jnp.float32) + b2_ref[...]
    h2 = jnp.maximum(h2, 0.0)

    # Layer 3: Linear(128 -> 128-padded) — real width is NUM_ACTIONS.
    q = jnp.dot(h2.astype(jnp.bfloat16), w3p_ref[...],
                preferred_element_type=jnp.float32) + b3p_ref[...]
    return q                                                  # (tb, 128) f32


def dqn_q_kernel(x_ref, w1_ref, b1_ref, w2_ref, b2_ref, w3p_ref, b3p_ref, o_ref):
    """Forward pass: lane-dense (tb, 128) f32 Q-value slab."""
    q = _q_values(x_ref, w1_ref, b1_ref, w2_ref, b2_ref, w3p_ref, b3p_ref)
    o_ref[...] = q.astype(o_ref.dtype)


def dqn_act_kernel(x_ref, w1_ref, b1_ref, w2_ref, b2_ref, w3p_ref, b3p_ref, a_ref):
    """Fused greedy act(): argmax over the 15 real actions, (tb, 1) int32 out."""
    q = _q_values(x_ref, w1_ref, b1_ref, w2_ref, b2_ref, w3p_ref, b3p_ref)
    lane = jax.lax.broadcasted_iota(jnp.int32, q.shape, 1)    # (tb, 128)
    valid = lane < NUM_ACTIONS
    qm = jnp.where(valid, q, -jnp.inf)                        # mask padded lanes
    row_max = jnp.max(qm, axis=-1, keepdims=True)             # (tb, 1)
    cand = jnp.where(qm == row_max, lane, PADDED_OUT)
    a_ref[...] = jnp.min(cand, axis=-1, keepdims=True).astype(jnp.int32)


# ---------------------------------------------------------------------------
# Wrappers
# ---------------------------------------------------------------------------

def _batch_tiling(batch, tile_b):
    """Pick an 8-aligned batch tile; >= 2 grid steps whenever batch > 8 (v7x 2-TC)."""
    if batch > tile_b:
        tb = tile_b
    else:
        tb = 8 * pl.cdiv(pl.cdiv(batch, 2), 8)
    b_pad = tb * pl.cdiv(batch, tb)
    return tb, b_pad


def _run(kernel, x, prepped, out_width, out_dtype, tile_b):
    w1, b1, w2, b2, w3p, b3p = prepped
    batch = x.shape[0]
    tb, b_pad = _batch_tiling(batch, tile_b)
    if b_pad != batch:
        x = jnp.pad(x, ((0, b_pad - batch), (0, 0)))

    # Activations/output stream over the batch grid axis; weights stay VMEM-resident.
    resident = lambda a: pl.BlockSpec(a.shape, lambda i: (0, 0))

    return pl.pallas_call(
        kernel,
        out_shape=jax.ShapeDtypeStruct((b_pad, out_width), out_dtype),
        grid=(b_pad // tb,),
        in_specs=[
            pl.BlockSpec((tb, NUM_INPUTS), lambda i: (i, 0)),   # x (streamed)
            resident(w1), resident(b1),
            resident(w2), resident(b2),
            resident(w3p), resident(b3p),
        ],
        out_specs=pl.BlockSpec((tb, out_width), lambda i: (i, 0)),
        compiler_params=pltpu.CompilerParams(
            dimension_semantics=("parallel",)),                 # 2-TC sharding on v7x
    )(x, w1, b1, w2, b2, w3p, b3p)


def dqn_forward(x, prepped, *, tile_b=1024):
    """x: (B, NUM_INPUTS) f32 -> (B, NUM_ACTIONS) f32 Q-values (module forward)."""
    batch = x.shape[0]
    q = _run(dqn_q_kernel, x, prepped, PADDED_OUT, jnp.float32, tile_b)
    return q[:batch, :NUM_ACTIONS]


def dqn_act_greedy(x, prepped, *, tile_b=1024):
    """x: (B, NUM_INPUTS) f32 -> (B,) int32 greedy actions (fused act() hot path)."""
    batch = x.shape[0]
    a = _run(dqn_act_kernel, x, prepped, 1, jnp.int32, tile_b)
    return a[:batch, 0]


# ---------------------------------------------------------------------------
# Parameters
# ---------------------------------------------------------------------------

def init_params(key):
    """Deterministic init mimicking PyTorch's default Linear init
    (uniform(-1/sqrt(fan_in), 1/sqrt(fan_in)) for both weight and bias)."""
    def linear(key, fan_in, fan_out):
        kw, kb = jax.random.split(key)
        bound = 1.0 / jnp.sqrt(jnp.float32(fan_in))
        w = jax.random.uniform(kw, (fan_in, fan_out), jnp.float32, -bound, bound)
        b = jax.random.uniform(kb, (1, fan_out), jnp.float32, -bound, bound)
        return w, b

    k1, k2, k3 = jax.random.split(key, 3)
    w1, b1 = linear(k1, NUM_INPUTS, HIDDEN)
    w2, b2 = linear(k2, HIDDEN, HIDDEN)
    w3, b3 = linear(k3, HIDDEN, NUM_ACTIONS)
    return (w1, b1, w2, b2, w3, b3)


def prepare_params(params):
    """One-time prep (off the hot path): pad w3/b3 to 128 lanes, cast MXU weights bf16."""
    w1, b1, w2, b2, w3, b3 = params
    w3p = (jnp.zeros((HIDDEN, PADDED_OUT), jnp.float32)
           .at[:, :NUM_ACTIONS].set(w3).astype(jnp.bfloat16))
    b3p = jnp.zeros((1, PADDED_OUT), jnp.float32).at[:, :NUM_ACTIONS].set(b3)
    return (w1.astype(jnp.float32), b1.astype(jnp.float32),
            w2.astype(jnp.bfloat16), b2.astype(jnp.float32),
            w3p, b3p)


def reference_forward(x, raw_params):
    """JAX reference mirroring the kernel's numerics (bf16 MXU operands, f32 acc)."""
    w1, b1, w2, b2, w3, b3 = raw_params
    h1 = jnp.maximum(x @ w1 + b1, 0.0)
    h2 = jnp.maximum(
        jnp.dot(h1.astype(jnp.bfloat16), w2.astype(jnp.bfloat16),
                preferred_element_type=jnp.float32) + b2, 0.0)
    return jnp.dot(h2.astype(jnp.bfloat16), w3.astype(jnp.bfloat16),
                   preferred_element_type=jnp.float32) + b3


# ---------------------------------------------------------------------------
# Main
# ---------------------------------------------------------------------------

if __name__ == "__main__":
    key = jax.random.PRNGKey(0)
    kp, kx = jax.random.split(key)

    raw = init_params(kp)
    prepped = prepare_params(raw)   # one-time, hoisted off the per-step hot path

    # NOTE: at B=8 this call is pure fixed-overhead; in an RL rollout, stack many
    # states/timesteps per call to amortize dispatch — the kernel tiles the batch
    # axis automatically (default tile 1024).
    batch = 8
    x = jax.random.uniform(kx, (batch, NUM_INPUTS), jnp.float32, 0.0, 120.0)

    q = jax.block_until_ready(dqn_forward(x, prepped))
    ref = reference_forward(x, raw)
    assert q.shape == (batch, NUM_ACTIONS)
    assert jnp.allclose(q, ref, atol=2e-2, rtol=2e-2), "Q mismatch vs JAX reference"

    act = jax.block_until_ready(dqn_act_greedy(x, prepped))
    assert act.shape == (batch,)
    q_at_act = jnp.take_along_axis(q, act[:, None], axis=1)[:, 0]
    assert jnp.allclose(q_at_act, q.max(axis=1), atol=1e-3, rtol=1e-4), \
        "fused argmax disagrees with Q-value maximum"

    # Larger batch: exercises grid > 1 (2 tiles -> both v7x TCs) and batch padding.
    big = 600
    xb = jax.random.uniform(jax.random.PRNGKey(1), (big, NUM_INPUTS),
                            jnp.float32, 0.0, 120.0)
    qb = jax.block_until_ready(dqn_forward(xb, prepped))
    refb = reference_forward(xb, raw)
    assert qb.shape == (big, NUM_ACTIONS)
    assert jnp.allclose(qb, refb, atol=5e-2, rtol=2e-2), "Q mismatch (tiled batch)"

    actb = jax.block_until_ready(dqn_act_greedy(xb, prepped))
    assert actb.shape == (big,)
    qb_at = jnp.take_along_axis(qb, actb[:, None], axis=1)[:, 0]
    assert jnp.allclose(qb_at, qb.max(axis=1), atol=1e-3, rtol=1e-4), \
        "fused argmax disagrees with Q-value maximum (tiled batch)"

    print("KERNEL_OK")
</pallas_src>

<mosaic_0001>
module attributes {stable_mosaic.version = 11 : i64} {
  func.func @dqn_q_kernel(%arg0: i32, %arg1: memref<8x2xf32, #tpu.memory_space<vmem>>, %arg2: memref<2x128xf32, #tpu.memory_space<vmem>>, %arg3: memref<1x128xf32, #tpu.memory_space<vmem>>, %arg4: memref<128x128xbf16, #tpu.memory_space<vmem>>, %arg5: memref<1x128xf32, #tpu.memory_space<vmem>>, %arg6: memref<128x128xbf16, #tpu.memory_space<vmem>>, %arg7: memref<1x128xf32, #tpu.memory_space<vmem>>, %arg8: memref<8x128xf32, #tpu.memory_space<vmem>>) attributes {dimension_semantics = [#tpu.dimension_semantics<parallel>], iteration_bounds = array<i64: 1>, scalar_prefetch = 0 : i64, scratch_operands = 0 : i64, tpu.core_type = #tpu.core_type<tc>, window_params = [{transform_indices = @transform_0, window_bounds = array<i64: 8, 2>}, {pipeline_mode = #tpu.pipeline_mode<synchronous>, transform_indices = @transform_1, window_bounds = array<i64: 2, 128>}, {pipeline_mode = #tpu.pipeline_mode<synchronous>, transform_indices = @transform_2, window_bounds = array<i64: 1, 128>}, {pipeline_mode = #tpu.pipeline_mode<synchronous>, transform_indices = @transform_3, window_bounds = array<i64: 128, 128>}, {pipeline_mode = #tpu.pipeline_mode<synchronous>, transform_indices = @transform_4, window_bounds = array<i64: 1, 128>}, {pipeline_mode = #tpu.pipeline_mode<synchronous>, transform_indices = @transform_5, window_bounds = array<i64: 128, 128>}, {pipeline_mode = #tpu.pipeline_mode<synchronous>, transform_indices = @transform_6, window_bounds = array<i64: 1, 128>}, {transform_indices = @transform_7, window_bounds = array<i64: 8, 128>}]} {
    %c0 = arith.constant 0 : index
    %c0_0 = arith.constant 0 : index
    %0 = vector.load %arg1[%c0, %c0_0] : memref<8x2xf32, #tpu.memory_space<vmem>>, vector<8x2xf32>
    %1 = vector.extract_strided_slice %0 {offsets = [0, 0], sizes = [8, 1], strides = [1, 1]} : vector<8x2xf32> to vector<8x1xf32>
    %c0_1 = arith.constant 0 : index
    %c0_2 = arith.constant 0 : index
    %2 = vector.load %arg2[%c0_1, %c0_2] : memref<2x128xf32, #tpu.memory_space<vmem>>, vector<1x128xf32>
    %3 = vector.broadcast %1 : vector<8x1xf32> to vector<8x128xf32>
    %4 = vector.broadcast %2 : vector<1x128xf32> to vector<8x128xf32>
    %5 = arith.mulf %3, %4 : vector<8x128xf32>
    %6 = vector.extract_strided_slice %0 {offsets = [0, 1], sizes = [8, 1], strides = [1, 1]} : vector<8x2xf32> to vector<8x1xf32>
    %c1 = arith.constant 1 : index
    %c0_3 = arith.constant 0 : index
    %7 = vector.load %arg2[%c1, %c0_3] : memref<2x128xf32, #tpu.memory_space<vmem>>, vector<1x128xf32>
    %8 = vector.broadcast %6 : vector<8x1xf32> to vector<8x128xf32>
    %9 = vector.broadcast %7 : vector<1x128xf32> to vector<8x128xf32>
    %10 = arith.mulf %8, %9 : vector<8x128xf32>
    %11 = arith.addf %5, %10 : vector<8x128xf32>
    %c0_4 = arith.constant 0 : index
    %c0_5 = arith.constant 0 : index
    %12 = vector.load %arg3[%c0_4, %c0_5] : memref<1x128xf32, #tpu.memory_space<vmem>>, vector<1x128xf32>
    %13 = vector.broadcast %12 : vector<1x128xf32> to vector<8x128xf32>
    %14 = arith.addf %11, %13 : vector<8x128xf32>
    %cst = arith.constant 0.000000e+00 : f32
    %15 = vector.broadcast %cst : f32 to vector<8x128xf32>
    %16 = arith.maximumf %14, %15 : vector<8x128xf32>
    %17 = arith.truncf %16 : vector<8x128xf32> to vector<8x128xbf16>
    %c0_6 = arith.constant 0 : index
    %c0_7 = arith.constant 0 : index
    %18 = vector.load %arg4[%c0_6, %c0_7] : memref<128x128xbf16, #tpu.memory_space<vmem>>, vector<128x128xbf16>
    %cst_8 = arith.constant dense<0.000000e+00> : vector<8x128xf32>
    %19 = tpu.matmul %17, %18, %cst_8 {dimension_numbers = #tpu.dot_dimension_numbers<[1], [0], [0], [1], [0, 0, 1, 1], [], []>} : vector<8x128xbf16>, vector<128x128xbf16>, vector<8x128xf32> -> vector<8x128xf32>
    %c0_9 = arith.constant 0 : index
    %c0_10 = arith.constant 0 : index
    %20 = vector.load %arg5[%c0_9, %c0_10] : memref<1x128xf32, #tpu.memory_space<vmem>>, vector<1x128xf32>
    %21 = vector.broadcast %20 : vector<1x128xf32> to vector<8x128xf32>
    %22 = arith.addf %19, %21 : vector<8x128xf32>
    %cst_11 = arith.constant 0.000000e+00 : f32
    %23 = vector.broadcast %cst_11 : f32 to vector<8x128xf32>
    %24 = arith.maximumf %22, %23 : vector<8x128xf32>
    %25 = arith.truncf %24 : vector<8x128xf32> to vector<8x128xbf16>
    %c0_12 = arith.constant 0 : index
    %c0_13 = arith.constant 0 : index
    %26 = vector.load %arg6[%c0_12, %c0_13] : memref<128x128xbf16, #tpu.memory_space<vmem>>, vector<128x128xbf16>
    %cst_14 = arith.constant dense<0.000000e+00> : vector<8x128xf32>
    %27 = tpu.matmul %25, %26, %cst_14 {dimension_numbers = #tpu.dot_dimension_numbers<[1], [0], [0], [1], [0, 0, 1, 1], [], []>} : vector<8x128xbf16>, vector<128x128xbf16>, vector<8x128xf32> -> vector<8x128xf32>
    %c0_15 = arith.constant 0 : index
    %c0_16 = arith.constant 0 : index
    %28 = vector.load %arg7[%c0_15, %c0_16] : memref<1x128xf32, #tpu.memory_space<vmem>>, vector<1x128xf32>
    %29 = vector.broadcast %28 : vector<1x128xf32> to vector<8x128xf32>
    %30 = arith.addf %27, %29 : vector<8x128xf32>
    %c0_17 = arith.constant 0 : index
    %c0_18 = arith.constant 0 : index
    %31 = vector.load %arg8[%c0_17, %c0_18] : memref<8x128xf32, #tpu.memory_space<vmem>>, vector<8x128xf32>
    tpu.vector_store %arg8[%c0_17, %c0_18], %30 {strides = array<i32>} : memref<8x128xf32, #tpu.memory_space<vmem>>, vector<8x128xf32>,
    return
  }
  func.func @transform_0(%arg0: i32) -> (i32, i32) {
    %c0_i32 = arith.constant 0 : i32
    %c0_i32_0 = arith.constant 0 : i32
    return %arg0, %c0_i32 : i32, i32
  }
  func.func @transform_1(%arg0: i32) -> (i32, i32) {
    %c0_i32 = arith.constant 0 : i32
    %c0_i32_0 = arith.constant 0 : i32
    %c0_i32_1 = arith.constant 0 : i32
    return %c0_i32, %c0_i32_0 : i32, i32
  }
  func.func @transform_2(%arg0: i32) -> (i32, i32) {
    %c0_i32 = arith.constant 0 : i32
    %c0_i32_0 = arith.constant 0 : i32
    %c0_i32_1 = arith.constant 0 : i32
    return %c0_i32, %c0_i32_0 : i32, i32
  }
  func.func @transform_3(%arg0: i32) -> (i32, i32) {
    %c0_i32 = arith.constant 0 : i32
    %c0_i32_0 = arith.constant 0 : i32
    %c0_i32_1 = arith.constant 0 : i32
    return %c0_i32, %c0_i32_0 : i32, i32
  }
  func.func @transform_4(%arg0: i32) -> (i32, i32) {
    %c0_i32 = arith.constant 0 : i32
    %c0_i32_0 = arith.constant 0 : i32
    %c0_i32_1 = arith.constant 0 : i32
    return %c0_i32, %c0_i32_0 : i32, i32
  }
  func.func @transform_5(%arg0: i32) -> (i32, i32) {
    %c0_i32 = arith.constant 0 : i32
    %c0_i32_0 = arith.constant 0 : i32
    %c0_i32_1 = arith.constant 0 : i32
    return %c0_i32, %c0_i32_0 : i32, i32
  }
  func.func @transform_6(%arg0: i32) -> (i32, i32) {
    %c0_i32 = arith.constant 0 : i32
    %c0_i32_0 = arith.constant 0 : i32
    %c0_i32_1 = arith.constant 0 : i32
    return %c0_i32, %c0_i32_0 : i32, i32
  }
  func.func @transform_7(%arg0: i32) -> (i32, i32) {
    %c0_i32 = arith.constant 0 : i32
    %c0_i32_0 = arith.constant 0 : i32
    return %arg0, %c0_i32 : i32, i32
  }
}

</mosaic_0001>

<bundles_post_ra>
// kernel: tpu_custom_call.1
= control target key start
LH: loop header
LB: loop body
LE: loop exit
PB: predicated region body
PF: predicated region fallthrough
CT: control target
= control target key end

     0   :  { %12 = vsyncpa [#allocation3], 0  ;;  %s629_s0 = inlined_call_operand.vmem [shape: f32[8,2], index: 0, kind: input, shape index: {}]   ;;  %s630_s1 = inlined_call_operand.vmem [shape: f32[2,128], index: 1, kind: input, shape index: {}]   ;;  %s631_s2 = inlined_call_operand.vmem [shape: f32[1,128], index: 2, kind: input, shape index: {}]   ;;  %s632_s3 = inlined_call_operand.hbm [shape: bf16[128,128], index: 3, kind: input, shape index: {}]   ;;  %s633_s4 = inlined_call_operand.vmem [shape: f32[1,128], index: 4, kind: input, shape index: {}]   ;;  %s634_s5 = inlined_call_operand.hbm [shape: bf16[128,128], index: 5, kind: input, shape index: {}]   ;;  %s635_s6 = inlined_call_operand.vmem [shape: f32[1,128], index: 6, kind: input, shape index: {}]   ;;  %s636_s7 = inlined_call_operand.hbm [shape: f32[8,128], index: 7, kind: output, shape index: {}]  }
   0x1   :  { %13 = vsyncpa [#allocation6], 0 }
   0x2   :  { %14 = vsyncpa [#allocation4], 0  ;;  %s508_s24 = smov [#allocation2]   ;;  %s436_s28 = scalar_lea.hbm %s632_s3, 1024 }
   0x3   :  { %s26_s25 = sshll.u32 %s508_s24, 4  ;;  %p437_p0 = scmp.ne.s32.totalorder %s632_s3, %s436_s28  ;;  %s27_s25 = int_to_ptr.vmem [resolvable:$true] %s26_s25 }
   0x4   :  { %p440_p1 = scmp.lt.u32.totalorder %s436_s28, %s632_s3 }
   0x6   :  { %p442_p2 = pnand %p440_p1, %p437_p0 }
   0x8   :  { %445 = shalt.err (!%p442_p2)
}
   0x9   :  { %s446_s10 = scalar_lea.vmem %s27_s25, 1024  ;;  %p451_p4 = scmp.lt.s32.totalorder %s27_s25, %s27_s25 }
   0xa   :  { %p447_p3 = scmp.ne.s32.totalorder %s27_s25, %s446_s10  ;;  %p452_p5 = scmp.lt.s32.totalorder %s446_s10, %s446_s10 }
   0xc   :  { %p453_p6 = por %p452_p5, %p451_p4 }
   0xe   :  { %p454_p7 = pnand %p453_p6, %p447_p3 }
  0x10   :  { %457 = shalt.err (!%p454_p7)
}
  0x11   :  { %s509_s11 = smov 64   ;;  %s510_s12 = smov 4  }
  0x12   :  { %32 = dma.hbm_to_vmem [thread:$0]  %s632_s3, 1024, %s27_s25, [#allocation3], %s509_s11, %s509_s11, %s510_s12  }
  0x13   :  { %s511_s15 = smov [#allocation5]   ;;  %s458_s19 = scalar_lea.hbm %s634_s5, 1024 }
  0x14   :  { %s40_s16 = sshll.u32 %s511_s15, 4  ;;  %p459_p8 = scmp.ne.s32.totalorder %s634_s5, %s458_s19  ;;  %s41_s16 = int_to_ptr.vmem [resolvable:$true] %s40_s16 }
  0x15   :  { %p462_p9 = scmp.lt.u32.totalorder %s458_s19, %s634_s5 }
  0x17   :  { %p464_p10 = pnand %p462_p9, %p459_p8 }
  0x19   :  { %467 = shalt.err (!%p464_p10)
}
  0x1a   :  { %s468_s24 = scalar_lea.vmem %s41_s16, 1024  ;;  %p473_p12 = scmp.lt.s32.totalorder %s41_s16, %s41_s16 }
  0x1b   :  { %p469_p11 = scmp.ne.s32.totalorder %s41_s16, %s468_s24  ;;  %p474_p13 = scmp.lt.s32.totalorder %s468_s24, %s468_s24 }
  0x1d   :  { %p475_p0 = por %p474_p13, %p473_p12 }
  0x1f   :  { %p476_p1 = pnand %p475_p0, %p469_p11 }
  0x21   :  { %479 = shalt.err (!%p476_p1)
}
  0x22   :  { %46 = dma.hbm_to_vmem [thread:$0]  %s634_s5, 1024, %s41_s16, [#allocation6], %s509_s11, %s509_s11, %s510_s12  }
  0x23   :  { %502 = dma.done.wait [#allocation3], 1024  }
  0x24   :  { %503 = vsyncadd [#allocation3], 4294966272 }
  0x25   :  { %504 = dma.done.wait [#allocation6], 1024  }
  0x26   :  { %505 = vsyncadd [#allocation6], 4294966272  ;;  %v512_v0 = vmov 0   ;;  %v513_v1 = vmov 0.0   ;;  %v56_v2 = vld [vmem:[%s629_s0] sm:$0xff]  ;;  %v421_v4 = vld [vmem:[#allocation2 + $0x8] sm:$0xff]  }
  0x27   :  { %418 = vset.pattern.permute.xlu0 %v512_v0  ;;  %369 = vmatprep.subr.bf16.mxu0 %v513_v1  ;;  %v420_v3 = vld [vmem:[#allocation2] sm:$0xff]   ;;  %v514_v5 = vmov 1   ;;  %v422_v6 = vld [vmem:[#allocation2 + $0x10] sm:$0xff]   ;;  %v423_v7 = vld [vmem:[#allocation2 + $0x18] sm:$0xff]   ;;  %vm515_vm0 = vmmov 0   ;;  %s516_s11 = smov [#allocation7]  }
  0x28   :  { %389 = vmatprep.subr.bf16.mxu1 %v513_v1  ;;  %60 = vperm.xlu0 %418, %v56_v2   ;;  %v424_v8 = vld [vmem:[#allocation2 + $0x20] sm:$0xff]   ;;  %v429_v10 = vld [vmem:[#allocation5 + $0x8] sm:$0xff]   ;;  %v430_v12 = vld [vmem:[#allocation5 + $0x10] sm:$0xff]   ;;  %s320_s12 = sshll.u32 %s516_s11, 4  ;;  %s321_s12 = int_to_ptr.vmem [resolvable:$true] %s320_s12 }
  0x29   :  { %370 = vmatpush3.bf16.msra.mxu0 %v420_v3  ;;  %385 = vmatprep.mubr.msk.bf16.mxu0 %vm515_vm0, %v513_v1  ;;  %v428_v9 = vld [vmem:[#allocation5] sm:$0xff]   ;;  %v425_v11 = vld [vmem:[#allocation2 + $0x28] sm:$0xff]   ;;  %v426_v13 = vld [vmem:[#allocation2 + $0x30] sm:$0xff]   ;;  %p485_p3 = scmp.lt.s32.totalorder %s321_s12, %s321_s12 }
  0x2a   :  { %371 = vmatprep.subr.bf16.mxu0 %v513_v1  ;;  %405 = vmatprep.mubr.msk.bf16.mxu1 %vm515_vm0, %v513_v1  ;;  %v431_v14 = vld [vmem:[#allocation5 + $0x18] sm:$0xff]   ;;  %v432_v16 = vld [vmem:[#allocation5 + $0x20] sm:$0xff]   ;;  %v433_v17 = vld [vmem:[#allocation5 + $0x28] sm:$0xff]  }
  0x2b   :  { %390 = vmatpush3.bf16.msra.mxu1 %v428_v9  ;;  %v427_v15 = vld [vmem:[#allocation2 + $0x38] sm:$0xff]   ;;  %v330_v19 = vld [vmem:[%s630_s1] ss:$0 sm:$0xff]  ;;  %v331_v20 = vld [vmem:[%s630_s1 + $0x1] ss:$0 sm:$0xff] }
  0x2c   :  { %419 = vset.pattern.permute.xlu0 %v514_v5  ;;  %391 = vmatprep.subr.bf16.mxu1 %v513_v1  ;;  %v332_v24 = vld [vmem:[%s631_s2] ss:$0 sm:$0xff]  ;;  %v434_v29 = vld [vmem:[#allocation5 + $0x30] sm:$0xff]   ;;  %v435_v30 = vld [vmem:[#allocation5 + $0x38] sm:$0xff]  }
  0x2d   :  { %70 = vperm.xlu0 %419, %v56_v2   ;;  %372 = vmatpush3.bf16.msra.mxu0 %v421_v4  ;;  %v333_v31 = vld [vmem:[%s633_s4] ss:$0 sm:$0xff]  ;;  %s480_s4 = scalar_lea.vmem %s321_s12, 128 }
  0x2e   :  { %373 = vmatprep.subr.bf16.mxu0 %v513_v1  ;;  %v342_v39 = vld [vmem:[%s635_s6] ss:$0 sm:$0xff]  ;;  %p481_p2 = scmp.ne.s32.totalorder %s321_s12, %s480_s4  ;;  %p486_p4 = scmp.lt.s32.totalorder %s480_s4, %s480_s4 }
  0x2f   :  { %392 = vmatpush3.bf16.msra.mxu1 %v429_v10 }
  0x30   :  { %393 = vmatprep.subr.bf16.mxu1 %v513_v1  ;;  %p487_p5 = por %p486_p4, %p485_p3 }
  0x31   :  { %374 = vmatpush3.bf16.msra.mxu0 %v422_v6 }
  0x32   :  { %375 = vmatprep.subr.bf16.mxu0 %v513_v1  ;;  %p488_p6 = pnand %p487_p5, %p481_p2 }
  0x33   :  { %394 = vmatpush3.bf16.msra.mxu1 %v430_v12 }
  0x34   :  { %395 = vmatprep.subr.bf16.mxu1 %v513_v1 }
  0x35   :  { %376 = vmatpush3.bf16.msra.mxu0 %v423_v7 }
  0x36   :  { %377 = vmatprep.subr.bf16.mxu0 %v513_v1 }
  0x37   :  { %396 = vmatpush3.bf16.msra.mxu1 %v431_v14 }
  0x38   :  { %397 = vmatprep.subr.bf16.mxu1 %v513_v1 }
  0x39   :  { %378 = vmatpush3.bf16.msra.mxu0 %v424_v8 }
  0x3a   :  { %379 = vmatprep.subr.bf16.mxu0 %v513_v1 }
  0x3b   :  { %398 = vmatpush3.bf16.msra.mxu1 %v432_v16 }
  0x3c   :  { %399 = vmatprep.subr.bf16.mxu1 %v513_v1 }
  0x3d   :  { %380 = vmatpush3.bf16.msra.mxu0 %v425_v11 }
  0x3e   :  { %381 = vmatprep.subr.bf16.mxu0 %v513_v1 }
  0x3f   :  { %400 = vmatpush3.bf16.msra.mxu1 %v433_v17 }
  0x40   :  { %401 = vmatprep.subr.bf16.mxu1 %v513_v1 }
  0x41   :  { %382 = vmatpush3.bf16.msra.mxu0 %v426_v13 }
  0x42   :  { %383 = vmatprep.subr.bf16.mxu0 %v513_v1 }
  0x43   :  { %402 = vmatpush3.bf16.msra.mxu1 %v434_v29 }
  0x44   :  { %403 = vmatprep.subr.bf16.mxu1 %v513_v1 }
  0x45   :  { %384 = vmatpush3.bf16.msra.mxu0 %v427_v15 }
  0x47   :  { %404 = vmatpush3.bf16.msra.mxu1 %v435_v30 }
  0xa7   :  { %v61_v18 = vpop.permute.xlu0 %60 }
  0xa8   :  { %v67_v22 = vmul.f32 %v330_v19, %v61_v18 }
  0xac   :  { %v71_v21 = vpop.permute.xlu0 %70 }
  0xad   :  { %v77_v23 = vmul.f32 %v331_v20, %v71_v21 }
  0xaf   :  { %v78_v25 = vadd.f32 %v77_v23, %v67_v22 }
  0xb1   :  { %v86_v26 = vadd.f32 %v332_v24, %v78_v25 }
  0xb3   :  { %v87_v27 = vmax.f32 %v86_v26, 0.0 }
  0xb5   :  { %v88_v28 = vpack.c.bf16 %v87_v27, %v87_v27 }
  0xb7   :  { %386 = vmatmul.mubr.bf16.vlgmr.msra.gmra.mrb[0].mxu0 %v88_v28 }
 0x18a   :  { %v194_v32 = vpop.f32.mrb[0].mxu0 }
 0x18b   :  { %v195_v33 = vadd.f32 %v333_v31, %v194_v32  ;;  %v387_v34 = vpop.f32.mrb[1].mxu0 }
 0x18c   :  { %v197_v35 = vpop.f32.mrb[2].mxu0 }
 0x18d   :  { %v200_v36 = vmax.f32 %v195_v33, 0.0  ;;  %v388_v37 = vpop.f32.mrb[3].mxu0 }
 0x18f   :  { %v201_v38 = vpack.c.bf16 %v200_v36, %v200_v36 }
 0x191   :  { %406 = vmatmul.mubr.bf16.vlgmr.msra.gmra.mrb[0].mxu1 %v201_v38 }
 0x264   :  { %v307_v40 = vpop.f32.mrb[0].mxu1 }
 0x265   :  { %v308_v41 = vadd.f32 %v342_v39, %v307_v40  ;;  %v407_v42 = vpop.f32.mrb[1].mxu1 }
 0x266   :  { %v310_v43 = vpop.f32.mrb[2].mxu1 }
 0x267   :  { %313 = vst [vmem:[#allocation7] sm:$0xff] %v308_v41  ;;  %v408_v44 = vpop.f32.mrb[3].mxu1 }
 0x268   :  { %491 = shalt.err (!%p488_p6)
}
 0x269   :  { %s492_s6 = scalar_lea.hbm %s636_s7, 128 }
 0x26a   :  { %p493_p7 = scmp.ne.s32.totalorder %s636_s7, %s492_s6  ;;  %p496_p8 = scmp.lt.u32.totalorder %s492_s6, %s636_s7 }
 0x26c   :  { %p498_p9 = pnand %p496_p8, %p493_p7 }
 0x26e   :  { %501 = shalt.err (!%p498_p9)
}
 0x26f   :  { %323 = dma.vmem_to_hbm [thread:$0]  %s321_s12, 128, %s636_s7, [#allocation4]  }
 0x270   :  { %506 = dma.done.wait [#allocation4], 128  }
 0x271   :  { %507 = vsyncadd [#allocation4], 4294967168 }
 0x272   :  { %327 = vsyncpa [#allocation3], 1 }
 0x273   :  { %328 = vsyncpa [#allocation6], 1 }
 0x274   :  { %329 = vsyncpa [#allocation4], 1 }

</bundles_post_ra>
